<compile_context>
chip_gen: v7x
topology: tpu7x:2x2x1
jax: 0.10.0
libtpu: 0.0.40
codegen_flags: <defaults>
</compile_context>

<pallas_src>
import functools

import jax
import jax.numpy as jnp
import numpy as np
from jax.experimental import pallas as pl
from jax.experimental.pallas import tpu as pltpu


def _ceil_div(a, b):
    return -(-a // b)


def _round_up(a, b):
    return _ceil_div(a, b) * b


# ---------------------------------------------------------------------------
# Fused OverlapPatchEmbed forward
# ---------------------------------------------------------------------------
def overlap_patch_embed(x_nchw, params, *, patch_size=7, stride=4, eps=1e-5,
                        row_tile=None, out_dtype=jnp.float32):
    """x_nchw: (B, C, H, W) float32.  Returns (tokens (B, Ho*Wo, E), Ho, Wo)."""
    k = int(patch_size)
    s = int(stride)
    pad = k // 2
    nd = _ceil_div(k, s)                 # taps per spatial dim after space-to-depth

    B, C, H, W = x_nchw.shape
    w = params["proj_w"]                 # (E, C, k, k)
    E = w.shape[0]

    Ho = (H + 2 * pad - k) // s + 1
    Wo = (W + 2 * pad - k) // s + 1

    # Row-tile size: one fused (th*Wo, SC) x (SC, E) dot per tap per grid step.
    if row_tile is None:
        row_tile = min(Ho, max(1, 4096 // max(Wo, 1)))
    th = max(1, min(int(row_tile), Ho))
    n_rt = _ceil_div(Ho, th)             # grid steps along output rows

    # Padded / space-to-depth input geometry.  Hb includes the nd-1 halo row
    # blocks plus enough zero rows that the ragged last row tile never reads
    # out of bounds; th / n_rt / Hb are derived together so they always agree.
    Hb = max(n_rt * th + nd - 1, _ceil_div(pad + H, s))
    Wb = max(Wo + nd - 1, _ceil_div(pad + W, s))
    Hp, Wp = Hb * s, Wb * s
    SC = s * s * C                       # space-to-depth channel depth

    # bf16 cast + spatial zero-pad (NCHW), then ONE fused reshape/transpose to
    # the space-to-depth layout (B, Hb, Wb, s*s*C).
    x = jnp.pad(x_nchw.astype(jnp.bfloat16),
                ((0, 0), (0, 0), (pad, Hp - pad - H), (pad, Wp - pad - W)))
    xs = x.reshape(B, C, Hb, s, Wb, s)
    xs = xs.transpose(0, 2, 4, 3, 5, 1).reshape(B, Hb, Wb, SC)

    # Fold BatchNorm (eval mode) and conv bias: y = conv(x, W*scale) + shift.
    scale = params["bn_gamma"] / jnp.sqrt(params["bn_var"] + eps)          # (E,)
    shift = (params["proj_b"] * scale
             + params["bn_beta"] - params["bn_mean"] * scale)
    shift = shift.astype(jnp.float32).reshape(1, E)

    # Conv weight -> per-tap (SC, E) matrices matching the s2d channel layout
    # (si, sj, c), zero-padded for kernel offsets >= k.
    w_s = w * scale[:, None, None, None]                                    # (E,C,k,k)
    w_p = jnp.pad(w_s, ((0, 0), (0, 0), (0, nd * s - k), (0, nd * s - k)))  # (E,C,nd*s,nd*s)
    w_p = w_p.reshape(E, C, nd, s, nd, s)
    w2 = jnp.transpose(w_p, (2, 4, 3, 5, 1, 0)).reshape(nd * nd, SC, E)
    w2 = w2.astype(jnp.bfloat16)

    def kernel(x_ref, w_ref, shift_ref, o_ref):
        # x_ref:     (Hb, Wb, SC)   bf16  s2d image of this batch (DMA'd once per
        #                                 batch: block index is constant in r)
        # w_ref:     (nd*nd, SC, E) bf16  BN-folded weight, one (SC, E) per tap
        # shift_ref: (1, E)         f32   folded conv-bias + BN shift
        # o_ref:     (th, Wo, E)          output row tile (tokens)
        row0 = pl.program_id(1) * th
        acc = None
        for di in range(nd):                                  # nd*nd = 4 taps
            for dj in range(nd):
                slab = x_ref[pl.ds(row0 + di, th), dj:dj + Wo, :]   # (th, Wo, SC)
                d = jnp.dot(slab.reshape(th * Wo, SC),
                            w_ref[di * nd + dj],
                            preferred_element_type=jnp.float32)     # (th*Wo, E)
                acc = d if acc is None else acc + d
        acc = acc + shift_ref[...]                            # one broadcast add
        o_ref[...] = acc.reshape(th, Wo, E).astype(o_ref.dtype)

    # VMEM budget: block footprint (assumed double-buffered) + compute scratch,
    # capped with headroom below this chip's physical VMEM.
    lane = 128
    slab_buf = Hb * _round_up(Wb, 16) * _round_up(SC, lane) * 2
    w_buf = nd * nd * _round_up(SC, 16) * _round_up(E, lane) * 2
    o_buf = th * _round_up(Wo, 8) * _round_up(E, lane) * np.dtype(out_dtype).itemsize
    acc_scr = th * Wo * _round_up(E, lane) * 4
    tap_scr = th * _round_up(Wo, 16) * _round_up(SC, lane) * 2
    est = (2 * slab_buf + 2 * w_buf + 2 * o_buf
           + 3 * acc_scr + 2 * tap_scr + (2 << 20))
    try:
        phys_vmem = int(pltpu.get_tpu_info().vmem_capacity_bytes)
    except Exception:
        phys_vmem = 64 << 20             # conservative (v7x per-TensorCore)
    vmem_limit = int(min(max(est, 8 << 20), (phys_vmem * 7) // 8))

    out = pl.pallas_call(
        kernel,
        out_shape=jax.ShapeDtypeStruct((B, Ho, Wo, E), out_dtype),
        grid=(B, n_rt),
        in_specs=[
            # Full s2d image per batch; index constant along the row-tile axis
            # -> DMA'd into VMEM only once per batch.
            pl.BlockSpec((None, Hb, Wb, SC), lambda b, r: (b, 0, 0, 0)),
            pl.BlockSpec((nd * nd, SC, E), lambda b, r: (0, 0, 0)),
            pl.BlockSpec((1, E), lambda b, r: (0, 0)),
        ],
        out_specs=pl.BlockSpec((None, th, Wo, E), lambda b, r: (b, r, 0, 0)),
        compiler_params=pltpu.CompilerParams(
            # Batch axis parallel (v7x megacore shards on it -> one image slab
            # per core); row-tile axis arbitrary.
            dimension_semantics=("parallel", "arbitrary"),
            vmem_limit_bytes=vmem_limit),
    )(xs, w2, shift)

    tokens = out.reshape(B, Ho * Wo, E)   # == flatten(2).transpose(1, 2) in NCHW
    return tokens, Ho, Wo


# ---------------------------------------------------------------------------
# Pure-JAX reference (sanity check)
# ---------------------------------------------------------------------------
def reference(x_nchw, params, *, patch_size=7, stride=4, eps=1e-5):
    pad = patch_size // 2
    y = jax.lax.conv_general_dilated(
        x_nchw, params["proj_w"],
        window_strides=(stride, stride),
        padding=((pad, pad), (pad, pad)),
        dimension_numbers=("NCHW", "OIHW", "NCHW"))
    y = y + params["proj_b"][None, :, None, None]
    scale = params["bn_gamma"] / jnp.sqrt(params["bn_var"] + eps)
    shift = params["bn_beta"] - params["bn_mean"] * scale
    y = y * scale[None, :, None, None] + shift[None, :, None, None]
    B, E, Ho, Wo = y.shape
    return y.reshape(B, E, Ho * Wo).transpose(0, 2, 1), Ho, Wo


# ---------------------------------------------------------------------------
if __name__ == "__main__":
    patch_size, stride = 7, 4
    in_chans, embed_dim = 3, 32

    key = jax.random.PRNGKey(0)
    k_x, k_w, k_b, k_g, k_be, k_m, k_v, k_x2 = jax.random.split(key, 8)

    params = {
        "proj_w": 0.1 * jax.random.normal(
            k_w, (embed_dim, in_chans, patch_size, patch_size), jnp.float32),
        "proj_b": 0.1 * jax.random.normal(k_b, (embed_dim,), jnp.float32),
        "bn_gamma": 1.0 + 0.1 * jax.random.normal(k_g, (embed_dim,), jnp.float32),
        "bn_beta": 0.1 * jax.random.normal(k_be, (embed_dim,), jnp.float32),
        "bn_mean": 0.1 * jax.random.normal(k_m, (embed_dim,), jnp.float32),
        "bn_var": jnp.abs(1.0 + 0.1 * jax.random.normal(k_v, (embed_dim,), jnp.float32)),
    }

    # TODO(synk): SyncBN cross-device batch-statistic synchronization (training
    # mode) is not implemented; BN runs in eval mode with running stats folded.

    # ---- main check: B=2, 32x32 input (Ho = Wo = 8, single row tile) ------
    x = jax.random.normal(k_x, (2, in_chans, 32, 32), dtype=jnp.float32)
    fwd = jax.jit(functools.partial(
        overlap_patch_embed, patch_size=patch_size, stride=stride))
    tokens, Ho, Wo = fwd(x, params)
    tokens = jax.block_until_ready(tokens)

    ref_tokens, ref_Ho, ref_Wo = reference(
        x, params, patch_size=patch_size, stride=stride)
    assert (int(Ho), int(Wo)) == (ref_Ho, ref_Wo)
    # bf16 activations/weights with f32 accumulation -> relaxed tolerance.
    np.testing.assert_allclose(np.asarray(tokens), np.asarray(ref_tokens),
                               atol=3e-2, rtol=3e-2)

    # ---- ragged check: Ho % row_tile != 0, Wo not a multiple of 8 ---------
    x2 = jax.random.normal(k_x2, (1, in_chans, 36, 36), dtype=jnp.float32)
    fwd2 = jax.jit(functools.partial(
        overlap_patch_embed, patch_size=patch_size, stride=stride, row_tile=4))
    tokens2, Ho2, Wo2 = fwd2(x2, params)
    tokens2 = jax.block_until_ready(tokens2)

    ref_tokens2, ref_Ho2, ref_Wo2 = reference(
        x2, params, patch_size=patch_size, stride=stride)
    assert (int(Ho2), int(Wo2)) == (ref_Ho2, ref_Wo2)
    np.testing.assert_allclose(np.asarray(tokens2), np.asarray(ref_tokens2),
                               atol=3e-2, rtol=3e-2)

    print("KERNEL_OK")
</pallas_src>

<mosaic_0001>
module attributes {stable_mosaic.version = 11 : i64} {
  func.func @kernel(%arg0: i32, %arg1: i32, %arg2: memref<1x9x9x48xbf16, #tpu.memory_space<vmem>>, %arg3: memref<4x48x32xbf16, #tpu.memory_space<vmem>>, %arg4: memref<1x32xf32, #tpu.memory_space<vmem>>, %arg5: memref<1x8x8x32xf32, #tpu.memory_space<vmem>>) attributes {dimension_semantics = [#tpu.dimension_semantics<parallel>, #tpu.dimension_semantics<arbitrary>], iteration_bounds = array<i64: 2, 1>, scalar_prefetch = 0 : i64, scratch_operands = 0 : i64, tpu.core_type = #tpu.core_type<tc>, window_params = [{transform_indices = @transform_0, window_bounds = array<i64: 1, 9, 9, 48>}, {pipeline_mode = #tpu.pipeline_mode<synchronous>, transform_indices = @transform_1, window_bounds = array<i64: 4, 48, 32>}, {pipeline_mode = #tpu.pipeline_mode<synchronous>, transform_indices = @transform_2, window_bounds = array<i64: 1, 32>}, {transform_indices = @transform_3, window_bounds = array<i64: 1, 8, 8, 32>}]} {
    %c8_i32 = arith.constant 8 : i32
    %0 = arith.muli %arg1, %c8_i32 : i32
    %c0_i32 = arith.constant 0 : i32
    %1 = arith.addi %0, %c0_i32 : i32
    %c0 = arith.constant 0 : index
    %2 = arith.index_cast %1 : i32 to index
    %c0_0 = arith.constant 0 : index
    %c0_1 = arith.constant 0 : index
    %3 = vector.load %arg2[%c0, %2, %c0_0, %c0_1] : memref<1x9x9x48xbf16, #tpu.memory_space<vmem>>, vector<1x8x8x48xbf16>
    %4 = vector.shape_cast %3 : vector<1x8x8x48xbf16> to vector<8x8x48xbf16>
    %5 = vector.shape_cast %4 : vector<8x8x48xbf16> to vector<64x48xbf16>
    %c0_2 = arith.constant 0 : index
    %c0_3 = arith.constant 0 : index
    %c0_4 = arith.constant 0 : index
    %6 = vector.load %arg3[%c0_2, %c0_3, %c0_4] : memref<4x48x32xbf16, #tpu.memory_space<vmem>>, vector<1x48x32xbf16>
    %7 = vector.shape_cast %6 : vector<1x48x32xbf16> to vector<48x32xbf16>
    %cst = arith.constant dense<0.000000e+00> : vector<64x32xf32>
    %8 = tpu.matmul %5, %7, %cst {dimension_numbers = #tpu.dot_dimension_numbers<[1], [0], [0], [1], [0, 0, 1, 1], [], []>} : vector<64x48xbf16>, vector<48x32xbf16>, vector<64x32xf32> -> vector<64x32xf32>
    %c0_i32_5 = arith.constant 0 : i32
    %9 = arith.addi %0, %c0_i32_5 : i32
    %c0_6 = arith.constant 0 : index
    %10 = arith.index_cast %9 : i32 to index
    %c1 = arith.constant 1 : index
    %c0_7 = arith.constant 0 : index
    %11 = vector.load %arg2[%c0_6, %10, %c1, %c0_7] : memref<1x9x9x48xbf16, #tpu.memory_space<vmem>>, vector<1x8x8x48xbf16>
    %12 = vector.shape_cast %11 : vector<1x8x8x48xbf16> to vector<8x8x48xbf16>
    %13 = vector.shape_cast %12 : vector<8x8x48xbf16> to vector<64x48xbf16>
    %c1_8 = arith.constant 1 : index
    %c0_9 = arith.constant 0 : index
    %c0_10 = arith.constant 0 : index
    %14 = vector.load %arg3[%c1_8, %c0_9, %c0_10] : memref<4x48x32xbf16, #tpu.memory_space<vmem>>, vector<1x48x32xbf16>
    %15 = vector.shape_cast %14 : vector<1x48x32xbf16> to vector<48x32xbf16>
    %cst_11 = arith.constant dense<0.000000e+00> : vector<64x32xf32>
    %16 = tpu.matmul %13, %15, %cst_11 {dimension_numbers = #tpu.dot_dimension_numbers<[1], [0], [0], [1], [0, 0, 1, 1], [], []>} : vector<64x48xbf16>, vector<48x32xbf16>, vector<64x32xf32> -> vector<64x32xf32>
    %17 = arith.addf %8, %16 : vector<64x32xf32>
    %c1_i32 = arith.constant 1 : i32
    %18 = arith.addi %0, %c1_i32 : i32
    %c0_12 = arith.constant 0 : index
    %19 = arith.index_cast %18 : i32 to index
    %c0_13 = arith.constant 0 : index
    %c0_14 = arith.constant 0 : index
    %20 = vector.load %arg2[%c0_12, %19, %c0_13, %c0_14] : memref<1x9x9x48xbf16, #tpu.memory_space<vmem>>, vector<1x8x8x48xbf16>
    %21 = vector.shape_cast %20 : vector<1x8x8x48xbf16> to vector<8x8x48xbf16>
    %22 = vector.shape_cast %21 : vector<8x8x48xbf16> to vector<64x48xbf16>
    %c2 = arith.constant 2 : index
    %c0_15 = arith.constant 0 : index
    %c0_16 = arith.constant 0 : index
    %23 = vector.load %arg3[%c2, %c0_15, %c0_16] : memref<4x48x32xbf16, #tpu.memory_space<vmem>>, vector<1x48x32xbf16>
    %24 = vector.shape_cast %23 : vector<1x48x32xbf16> to vector<48x32xbf16>
    %cst_17 = arith.constant dense<0.000000e+00> : vector<64x32xf32>
    %25 = tpu.matmul %22, %24, %cst_17 {dimension_numbers = #tpu.dot_dimension_numbers<[1], [0], [0], [1], [0, 0, 1, 1], [], []>} : vector<64x48xbf16>, vector<48x32xbf16>, vector<64x32xf32> -> vector<64x32xf32>
    %26 = arith.addf %17, %25 : vector<64x32xf32>
    %c1_i32_18 = arith.constant 1 : i32
    %27 = arith.addi %0, %c1_i32_18 : i32
    %c0_19 = arith.constant 0 : index
    %28 = arith.index_cast %27 : i32 to index
    %c1_20 = arith.constant 1 : index
    %c0_21 = arith.constant 0 : index
    %29 = vector.load %arg2[%c0_19, %28, %c1_20, %c0_21] : memref<1x9x9x48xbf16, #tpu.memory_space<vmem>>, vector<1x8x8x48xbf16>
    %30 = vector.shape_cast %29 : vector<1x8x8x48xbf16> to vector<8x8x48xbf16>
    %31 = vector.shape_cast %30 : vector<8x8x48xbf16> to vector<64x48xbf16>
    %c3 = arith.constant 3 : index
    %c0_22 = arith.constant 0 : index
    %c0_23 = arith.constant 0 : index
    %32 = vector.load %arg3[%c3, %c0_22, %c0_23] : memref<4x48x32xbf16, #tpu.memory_space<vmem>>, vector<1x48x32xbf16>
    %33 = vector.shape_cast %32 : vector<1x48x32xbf16> to vector<48x32xbf16>
    %cst_24 = arith.constant dense<0.000000e+00> : vector<64x32xf32>
    %34 = tpu.matmul %31, %33, %cst_24 {dimension_numbers = #tpu.dot_dimension_numbers<[1], [0], [0], [1], [0, 0, 1, 1], [], []>} : vector<64x48xbf16>, vector<48x32xbf16>, vector<64x32xf32> -> vector<64x32xf32>
    %35 = arith.addf %26, %34 : vector<64x32xf32>
    %c0_25 = arith.constant 0 : index
    %c0_26 = arith.constant 0 : index
    %36 = vector.load %arg4[%c0_25, %c0_26] : memref<1x32xf32, #tpu.memory_space<vmem>>, vector<1x32xf32>
    %37 = vector.broadcast %36 : vector<1x32xf32> to vector<64x32xf32>
    %38 = arith.addf %35, %37 : vector<64x32xf32>
    %39 = vector.shape_cast %38 : vector<64x32xf32> to vector<8x8x32xf32>
    %c0_27 = arith.constant 0 : index
    %c0_28 = arith.constant 0 : index
    %c0_29 = arith.constant 0 : index
    %c0_30 = arith.constant 0 : index
    %40 = vector.load %arg5[%c0_27, %c0_28, %c0_29, %c0_30] : memref<1x8x8x32xf32, #tpu.memory_space<vmem>>, vector<1x8x8x32xf32>
    %41 = vector.shape_cast %40 : vector<1x8x8x32xf32> to vector<8x8x32xf32>
    %42 = vector.shape_cast %39 : vector<8x8x32xf32> to vector<1x8x8x32xf32>
    tpu.vector_store %arg5[%c0_27, %c0_28, %c0_29, %c0_30], %42 {strides = array<i32>} : memref<1x8x8x32xf32, #tpu.memory_space<vmem>>, vector<1x8x8x32xf32>,
    return
  }
  func.func @transform_0(%arg0: i32, %arg1: i32) -> (i32, i32, i32, i32) {
    %c0_i32 = arith.constant 0 : i32
    %c0_i32_0 = arith.constant 0 : i32
    %c0_i32_1 = arith.constant 0 : i32
    %c0_i32_2 = arith.constant 0 : i32
    return %arg0, %c0_i32, %c0_i32_0, %c0_i32_1 : i32, i32, i32, i32
  }
  func.func @transform_1(%arg0: i32, %arg1: i32) -> (i32, i32, i32) {
    %c0_i32 = arith.constant 0 : i32
    %c0_i32_0 = arith.constant 0 : i32
    %c0_i32_1 = arith.constant 0 : i32
    %c0_i32_2 = arith.constant 0 : i32
    return %c0_i32, %c0_i32_0, %c0_i32_1 : i32, i32, i32
  }
  func.func @transform_2(%arg0: i32, %arg1: i32) -> (i32, i32) {
    %c0_i32 = arith.constant 0 : i32
    %c0_i32_0 = arith.constant 0 : i32
    %c0_i32_1 = arith.constant 0 : i32
    return %c0_i32, %c0_i32_0 : i32, i32
  }
  func.func @transform_3(%arg0: i32, %arg1: i32) -> (i32, i32, i32, i32) {
    %c0_i32 = arith.constant 0 : i32
    %c0_i32_0 = arith.constant 0 : i32
    %c0_i32_1 = arith.constant 0 : i32
    return %arg0, %arg1, %c0_i32, %c0_i32_0 : i32, i32, i32, i32
  }
}

</mosaic_0001>

<bundles_post_ra>
// kernel: overlap_patch_embed.1
= control target key start
LH: loop header
LB: loop body
LE: loop exit
PB: predicated region body
PF: predicated region fallthrough
CT: control target
= control target key end

     0   :  { %s1364_s12 = smov 0   ;;  %s1366_s13 = smov 0   ;;  %s1597_s0 = inlined_call_operand.vmem [shape: bf16[2,9,9,48], index: 0, kind: input, shape index: {}]   ;;  %s1598_s1 = inlined_call_operand.vmem [shape: bf16[4,48,32], index: 1, kind: input, shape index: {}]   ;;  %s1599_s2 = inlined_call_operand.vmem [shape: f32[1,32], index: 2, kind: input, shape index: {}]   ;;  %s1600_s3 = inlined_call_operand.vmem [shape: f32[2,8,8,32], index: 3, kind: output, shape index: {}]  }
   0x1   :  { %s1368_s14 = smov 0  }
   0x2 LB: > { %s25_s15 = sadd.s32 1, %s1338_s13  ;;  %p1073_p0 = scmp.ge.s32.totalorder %s1342_s14, 1  ;;  %s1342_s14 = sphi %s1368_s14, %s13_s14   ;;  %s1338_s13 = sphi %s1366_s13, %s1604_s13   ;;  %s1334_s12 = sphi %s1364_s12, %s1603_s12  }
   0x3   : > { %p27_p1 = scmp.ge.s32.totalorder %s25_s15, 2  ;;  %p151_p2 = scmp.lt.s32.totalorder %s1342_s14, 3 }
   0x5   : > { %s1606_s15 = smov (%p27_p1, %s25_s15), 0  ;;  %p152_p3 = pnand %p1073_p0, %p151_p2 }
   0x6   : > { %v1300_v0 = vld [vmem:[%s1598_s1 + $0x30] sm:$0xff] (!%p152_p3)   ;;  %p179_p4 = scmp.lt.s32.totalorder (!%p152_p3), %s1334_s12, 1  ;;  %v1301_v1 = vld [vmem:[%s1598_s1 + $0x18] sm:$0xff] (!%p152_p3)   ;;  %v1303_v3 = vld [vmem:[%s1598_s1 + $0x20] sm:$0xff] (!%p152_p3)   ;;  %vm373_vm0 = vcmask (!%p152_p3), 392192   ;;  %vm973_vm4 = vcmask (!%p152_p3), 261120  }
   0x7   : > { %155 = sbr.rel (%p152_p3) target bundleno = 286 (0x11e), region = 32  ;;  %1223 = vmatprep.subr.bf16.mxu0 (!%p152_p3), %v1300_v0  ;;  %v1302_v2 = vld [vmem:[%s1598_s1 + $0x38] sm:$0xff] (!%p152_p3)   ;;  %1195 = vmatprep.subr.bf16.mxu1 (!%p152_p3), %v1301_v1  ;;  %v1304_v4 = vld [vmem:[%s1598_s1 + $0x40] sm:$0xff] (!%p152_p3)   ;;  %v1306_v5 = vld [vmem:[%s1598_s1 + $0x28] sm:$0xff] (!%p152_p3)   ;;  %vm221_vm1 = vsmask.f32 (!%p152_p3), 3328 }
   0x8   : > { %1224 = vmatpush3.bf16.msra.mxu0 (!%p152_p3), %v1300_v0  ;;  %1196 = vmatpush3.bf16.msra.mxu1 (!%p152_p3), %v1301_v1  ;;  %vm222_vm2 = vsmask.f32 (!%p152_p3), 7440  ;;  %v1426_v18 = vld [vmem:[%s1598_s1] sm:$0xff] (!%p152_p3)   ;;  %v1309_v19 = vld [vmem:[%s1598_s1 + $0x48] sm:$0xff] (!%p152_p3)   ;;  %v1312_v36 = vld [vmem:[%s1598_s1 + $0x50] sm:$0xff] (!%p152_p3)  }
   0x9   : > { %1225 = vmatprep.subr.bf16.mxu0 (!%p152_p3), %v1302_v2  ;;  %1197 = vmatprep.subr.bf16.mxu1 (!%p152_p3), %v1303_v3  ;;  %vm1443_vm3 = vmor (!%p152_p3), %vm221_vm1, %vm222_vm2  ;;  %v1314_v58 = vld [vmem:[%s1598_s1 + $0x58] sm:$0xff] (!%p152_p3)  }
   0xc   : > { %1226 = vmatpush3.bf16.msra.mxu0 (!%p152_p3), %v1302_v2  ;;  %1198 = vmatpush3.bf16.msra.mxu1 (!%p152_p3), %v1303_v3 }
   0xd   : > { %1227 = vmatprep.subr.bf16.mxu0 (!%p152_p3), %v1304_v4  ;;  %1199 = vmatprep.subr.bf16.mxu1 (!%p152_p3), %v1306_v5 }
   0xe   : > { %s1608_s12 = smov (!%p179_p4, %s1334_s12), 1 }
   0xf   : > { %s1275_s26 = smul.u32 72, %s1608_s12  ;;  %s1166_s21 = sshll.u32 %s1608_s12, 6 }
  0x10   : > { %1228 = vmatpush3.bf16.msra.mxu0 %v1304_v4  ;;  %1200 = vmatpush3.bf16.msra.mxu1 %v1306_v5 }
  0x11   : > { %s1406_s4 = scalar_lea.vmem %s1597_s0, %s1275_s26  ;;  %1209 = vmatprep.subr.bf16.mxu1 %v1426_v18  ;;  %1237 = vmatprep.subr.bf16.mxu0 %v1309_v19  ;;  %s1570_s26 = scalar_lea.vmem %s1600_s3, %s1166_s21 }
  0x12   : > { %v1305_v6 = vld [vmem:[%s1406_s4 + $0x8] ss:$8 sps:$4 sm:$0xff]   ;;  %v1307_v7 = vld [vmem:[%s1406_s4 + $0x18] ss:$8 sps:$4 sm:$0xff]   ;;  %v213_v10 = vld [vmem:[%s1406_s4 + $0x4] sm:$0x1] }
  0x13   : > { %1229 = vmatprep.mubr.msk.bf16.mxu0 %vm373_vm0, %v1305_v6  ;;  %v1412_v8 = vld [vmem:[%s1406_s4] sm:$0xf]  ;;  %v1415_v9 = vld [vmem:[%s1406_s4 + $0x8] sm:$0xf]  ;;  %v214_v11 = vld [vmem:[%s1406_s4 + $0xc] sm:$0x1] }
  0x14   : > { %v225_v12 = vshrl.u32 %v1412_v8, 16  ;;  %v228_v13 = vshll.u32 %v1412_v8, 16  ;;  %v234_v14 = vshll.u32 %v213_v10, 16  ;;  %v239_v15 = vshrl.u32 %v1415_v9, 16  ;;  %v1433_v26 = vld [vmem:[%s1406_s4 + $0x10] sm:$0xf]  ;;  %1230 = vmatmul.mubr.msk.bf16.vlgmr.msra.gmra.mrb[0].mxu0 %vm373_vm0, %v1307_v7 }
  0x15   : > { %v242_v16 = vshll.u32 %v1415_v9, 16  ;;  %v248_v17 = vshll.u32 %v214_v11, 16  ;;  %v1437_v28 = vld [vmem:[%s1406_s4 + $0x18] sm:$0xf]  ;;  %v215_v29 = vld [vmem:[%s1406_s4 + $0x14] sm:$0x1]  ;;  %1238 = vmatpush3.bf16.msra.mxu0 %v1309_v19 }
  0x16   : > { %v227_v20 = vrot.slane %v225_v12, 4  ;;  %v230_v21 = vrot.slane %v228_v13, 5  ;;  %v236_v22 = vrot.slane %v234_v14, 5  ;;  %v241_v23 = vrot.slane %v239_v15, 4  ;;  %v216_v30 = vld [vmem:[%s1406_s4 + $0x1c] sm:$0x1]  ;;  %1239 = vmatprep.subr.bf16.mxu0 %v1312_v36 }
  0x17   : > { %v244_v24 = vrot.slane %v242_v16, 5  ;;  %v250_v25 = vrot.slane %v248_v17, 5  ;;  %v253_v33 = vshrl.u32 %v1433_v26, 16  ;;  %v256_v34 = vshll.u32 %v1433_v26, 16  ;;  %v1310_v45 = vld [vmem:[%s1406_s4 + $0x28] ss:$8 sps:$4 sm:$0xff]  }
  0x18   : > { %v231_v27 = vor.u32 %v230_v21, %v227_v20  ;;  %v262_v35 = vshll.u32 %v215_v29, 16  ;;  %v267_v38 = vshrl.u32 %v1437_v28, 16  ;;  %v270_v39 = vshll.u32 %v1437_v28, 16  ;;  %1233 = vmatprep.mubr.msk.bf16.mxu0 %vm373_vm0, %v1310_v45  ;;  %v1311_v52 = vld [vmem:[%s1406_s4 + $0x38] ss:$8 sps:$4 sm:$0xff]   ;;  %v1313_v10 = vld [vmem:[%s1598_s1 + $0x8] sm:$0xff]  }
  0x19   : > { %v245_v32 = vor.u32 %v244_v24, %v241_v23  ;;  %v276_v40 = vshll.u32 %v216_v30, 16  ;;  %v255_v42 = vrot.slane %v253_v33, 4  ;;  %v258_v43 = vrot.slane %v256_v34, 5  ;;  %1240 = vmatpush3.bf16.msra.mxu0 %v1312_v36  ;;  %v1462_v56 = vld [vmem:[%s1406_s4 + $0x20] sm:$0xf] }
  0x1a   : > { %v232_v37 = vrot.slane %v231_v27, 4  ;;  %v264_v44 = vrot.slane %v262_v35, 5  ;;  %v269_v47 = vrot.slane %v267_v38, 4  ;;  %v272_v48 = vrot.slane %v270_v39, 5  ;;  %v1465_v57 = vld [vmem:[%s1406_s4 + $0x28] sm:$0xf]  ;;  %1241 = vmatprep.subr.bf16.mxu0 %v1314_v58 }
  0x1b   : > { %v246_v41 = vrot.slane %v245_v32, 4  ;;  %v278_v49 = vrot.slane %v276_v40, 5  ;;  %v259_v51 = vor.u32 %v258_v43, %v255_v42  ;;  %v217_v60 = vld [vmem:[%s1406_s4 + $0x24] sm:$0x1]  ;;  %v218_v61 = vld [vmem:[%s1406_s4 + $0x2c] sm:$0x1]  ;;  %v1095_v40 = vcombine.low %v1433_v26, %v1437_v28 }
  0x1c   : > { %v237_v46 = vsel %vm1443_vm3, %v232_v37, %v236_v22  ;;  %v273_v54 = vor.u32 %v272_v48, %v269_v47  ;;  %1234 = vmatmul.mubr.msk.bf16.gmra.mrb[4].mxu0 %vm373_vm0, %v1311_v52  ;;  %v281_v62 = vshrl.u32 %v1462_v56, 16  ;;  %v284_v0 = vshll.u32 %v1462_v56, 16  ;;  %v1486_v14 = vld [vmem:[%s1406_s4 + $0x30] sm:$0xf]  ;;  %v1489_v17 = vld [vmem:[%s1406_s4 + $0x38] sm:$0xf] }
  0x1d   : > { %v251_v50 = vsel %vm1443_vm3, %v246_v41, %v250_v25  ;;  %v260_v55 = vrot.slane %v259_v51, 4  ;;  %v290_v1 = vshll.u32 %v217_v60, 16  ;;  %v295_v2 = vshrl.u32 %v1465_v57, 16  ;;  %1242 = vmatpush3.bf16.msra.mxu0 %v1314_v58  ;;  %v219_v19 = vld [vmem:[%s1406_s4 + $0x34] sm:$0x1] }
  0x1e   : > { %v1083_v53 = vcombine.low %v237_v46, %v251_v50  ;;  %v274_v59 = vrot.slane %v273_v54, 4  ;;  %v283_v4 = vrot.slane %v281_v62, 4  ;;  %v298_v5 = vshll.u32 %v1465_v57, 16  ;;  %v220_v21 = vld [vmem:[%s1406_s4 + $0x3c] sm:$0x1]  ;;  %v1315_v35 = vld [vmem:[%s1598_s1 + $0x10] sm:$0xff]  }
  0x1f   : > { %v265_v63 = vsel %vm1443_vm3, %v260_v55, %v264_v44  ;;  %v304_v6 = vshll.u32 %v218_v61, 16  ;;  %v286_v11 = vrot.slane %v284_v0, 5  ;;  %v292_v12 = vrot.slane %v290_v1, 5  ;;  %v1130_v39 = vld [vmem:[%s1406_s4 + $0x8] sm:$0xf] }
  0x20   : > { %1201 = vmatprep.mubr.msk.bf16.mxu1 %vm373_vm0, %v1083_v53  ;;  %v279_v3 = vsel %vm1443_vm3, %v274_v59, %v278_v49  ;;  %v297_v13 = vrot.slane %v295_v2, 4  ;;  %v300_v15 = vrot.slane %v298_v5, 5  ;;  %v309_v22 = vshrl.u32 %v1486_v14, 16  ;;  %v1131_v45 = vld [vmem:[%s1406_s4 + $0xc] sm:$0x1] }
  0x21   : > { %v1084_v7 = vcombine.low %v265_v63, %v279_v3  ;;  %v306_v16 = vrot.slane %v304_v6, 5  ;;  %v287_v20 = vor.u32 %v286_v11, %v283_v4  ;;  %v312_v23 = vshll.u32 %v1486_v14, 16  ;;  %v1132_v46 = vld [vmem:[%s1406_s4 + $0x10] sm:$0xf]  ;;  %v1133_v47 = vld [vmem:[%s1406_s4 + $0x14] sm:$0x1] }
  0x22   : > { %v318_v24 = vshll.u32 %v219_v19, 16  ;;  %v301_v25 = vor.u32 %v300_v15, %v297_v13  ;;  %v323_v27 = vshrl.u32 %v1489_v17, 16  ;;  %v326_v29 = vshll.u32 %v1489_v17, 16  ;;  %v1134_v54 = vld [vmem:[%s1406_s4 + $0x18] sm:$0xf] }
  0x23   : > { %1202 = vmatmul.mubr.msk.bf16.vlgmr.msra.gmra.mrb[0].mxu1 %vm373_vm0, %v1084_v7  ;;  %v332_v30 = vshll.u32 %v220_v21, 16  ;;  %v288_v32 = vrot.slane %v287_v20, 4  ;;  %v311_v33 = vrot.slane %v309_v22, 4  ;;  %v314_v34 = vrot.slane %v312_v23, 5  ;;  %v1135_v61 = vld [vmem:[%s1406_s4 + $0x1c] sm:$0x1] }
  0x24   : > { %1210 = vmatpush3.bf16.msra.mxu1 %v1426_v18  ;;  %v1094_v18 = vcombine.low %v1412_v8, %v1415_v9  ;;  %v302_v36 = vrot.slane %v301_v25, 4  ;;  %v325_v37 = vrot.slane %v323_v27, 4  ;;  %v328_v38 = vrot.slane %v326_v29, 5  ;;  %v1136_v2 = vld [vmem:[%s1406_s4 + $0x20] sm:$0xf] }
  0x25   : > { %1211 = vmatprep.subr.bf16.mxu1 %v1313_v10  ;;  %v293_v41 = vsel %vm1443_vm3, %v288_v32, %v292_v12  ;;  %v315_v42 = vor.u32 %v314_v34, %v311_v33  ;;  %v320_v43 = vrot.slane %v318_v24, 5  ;;  %v334_v44 = vrot.slane %v332_v30, 5  ;;  %v1137_v6 = vld [vmem:[%s1406_s4 + $0x24] sm:$0x1]  ;;  %v1138_v15 = vld [vmem:[%s1406_s4 + $0x28] sm:$0xf] }
  0x26   : > { %v307_v8 = vsel %vm1443_vm3, %v302_v36, %v306_v16  ;;  %v329_v9 = vor.u32 %v328_v38, %v325_v37  ;;  %v725_v48 = vshrl.u32 %v1130_v39, 16  ;;  %v728_v49 = vshll.u32 %v1130_v39, 16  ;;  %v1139_v22 = vld [vmem:[%s1406_s4 + $0x2c] sm:$0x1]  ;;  %v1140_v29 = vld [vmem:[%s1406_s4 + $0x30] sm:$0xf] }
  0x27   : > { %v1085_v50 = vcombine.low %v293_v41, %v307_v8  ;;  %v316_v51 = vrot.slane %v315_v42, 4  ;;  %v734_v52 = vshll.u32 %v1131_v45, 16  ;;  %v739_v53 = vshrl.u32 %v1132_v46, 16  ;;  %v1141_v38 = vld [vmem:[%s1406_s4 + $0x34] sm:$0x1] }
  0x28   : > { %1212 = vmatpush3.bf16.msra.mxu1 %v1313_v10  ;;  %v330_v55 = vrot.slane %v329_v9, 4  ;;  %v727_v58 = vrot.slane %v725_v48, 4  ;;  %v730_v59 = vrot.slane %v728_v49, 5  ;;  %v742_v60 = vshll.u32 %v1132_v46, 16  ;;  %v1142_v45 = vld [vmem:[%s1406_s4 + $0x38] sm:$0xf] }
  0x29   : > { %1213 = vmatprep.subr.bf16.mxu1 %v1315_v35  ;;  %1205 = vmatprep.mubr.msk.bf16.mxu1 %vm373_vm0, %v1085_v50  ;;  %v321_v62 = vsel %vm1443_vm3, %v316_v51, %v320_v43  ;;  %v736_v63 = vrot.slane %v734_v52, 5  ;;  %v741_v0 = vrot.slane %v739_v53, 4  ;;  %v748_v1 = vshll.u32 %v1133_v47, 16  ;;  %v1143_v47 = vld [vmem:[%s1406_s4 + $0x3c] sm:$0x1] }
  0x2a   : > { %v335_v3 = vsel %vm1443_vm3, %v330_v55, %v334_v44  ;;  %v731_v4 = vor.u32 %v730_v59, %v727_v58  ;;  %v744_v5 = vrot.slane %v742_v60, 5  ;;  %v753_v7 = vshrl.u32 %v1134_v54, 16  ;;  %v1144_v51 = vld [vmem:[%s1406_s4 + $0x40] sm:$0xf] }
  0x2b   : > { %v1086_v10 = vcombine.low %v321_v62, %v335_v3  ;;  %v750_v11 = vrot.slane %v748_v1, 5  ;;  %v756_v12 = vshll.u32 %v1134_v54, 16  ;;  %v762_v13 = vshll.u32 %v1135_v61, 16  ;;  %v1145_v61 = vld [vmem:[%s1406_s4 + $0x44] sm:$0x1] }
  0x2c   : > { %1214 = vmatpush3.bf16.msra.mxu1 %v1315_v35  ;;  %v732_v16 = vrot.slane %v731_v4, 4  ;;  %v745_v19 = vor.u32 %v744_v5, %v741_v0  ;;  %v755_v20 = vrot.slane %v753_v7, 4  ;;  %v767_v21 = vshrl.u32 %v1136_v2, 16 }
  0x2d   : > { %1206 = vmatmul.mubr.msk.bf16.gmra.mrb[4].mxu1 %vm373_vm0, %v1086_v10  ;;  %v758_v23 = vrot.slane %v756_v12, 5  ;;  %v764_v24 = vrot.slane %v762_v13, 5  ;;  %v770_v25 = vshll.u32 %v1136_v2, 16  ;;  %v776_v27 = vshll.u32 %v1137_v6, 16 }
  0x2e   : > { %v737_v30 = vsel %vm1443_vm3, %v732_v16, %v736_v63  ;;  %v746_v32 = vrot.slane %v745_v19, 4  ;;  %v769_v33 = vrot.slane %v767_v21, 4  ;;  %1215 = vmatprep.mubr.msk.bf16.mxu1 %vm373_vm0, %v1094_v18  ;;  %v781_v34 = vshrl.u32 %v1138_v15, 16 }
  0x2f   : > { %v759_v35 = vor.u32 %v758_v23, %v755_v20  ;;  %v772_v36 = vrot.slane %v770_v25, 5  ;;  %v778_v37 = vrot.slane %v776_v27, 5  ;;  %v784_v39 = vshll.u32 %v1138_v15, 16 }
  0x30   : > { %v751_v41 = vsel %vm1443_vm3, %v746_v32, %v750_v11  ;;  %v783_v42 = vrot.slane %v781_v34, 4  ;;  %v790_v43 = vshll.u32 %v1139_v22, 16  ;;  %v795_v44 = vshrl.u32 %v1140_v29, 16 }
  0x31   : > { %v1152_v46 = vcombine.low %v737_v30, %v751_v41  ;;  %v760_v8 = vrot.slane %v759_v35, 4  ;;  %v773_v9 = vor.u32 %v772_v36, %v769_v33  ;;  %v786_v18 = vrot.slane %v784_v39, 5  ;;  %v1163_v30 = vld [vmem:[%s1599_s2] ss:$0 sm:$0xff] }
  0x32   : > { %v797_v48 = vrot.slane %v795_v44, 4  ;;  %v798_v49 = vshll.u32 %v1140_v29, 16  ;;  %v804_v50 = vshll.u32 %v1141_v38, 16  ;;  %v1096_v52 = vcombine.low %v1462_v56, %v1465_v57 }
  0x33   : > { %1243 = vmatprep.mubr.msk.bf16.mxu0 %vm373_vm0, %v1152_v46  ;;  %v765_v53 = vsel %vm1443_vm3, %v760_v8, %v764_v24  ;;  %v774_v54 = vrot.slane %v773_v9, 4  ;;  %v787_v55 = vor.u32 %v786_v18, %v783_v42  ;;  %v809_v58 = vshrl.u32 %v1142_v45, 16 }
  0x34   : > { %v792_v59 = vrot.slane %v790_v43, 5  ;;  %v800_v60 = vrot.slane %v798_v49, 5  ;;  %v812_v62 = vshll.u32 %v1142_v45, 16  ;;  %v818_v63 = vshll.u32 %v1143_v47, 16 }
  0x35   : > { %v779_v0 = vsel %vm1443_vm3, %v774_v54, %v778_v37  ;;  %1216 = vmatmul.mubr.msk.bf16.vlgmr.msra.gmra.mrb[0].mxu1 %vm373_vm0, %v1095_v40  ;;  %v788_v56 = vrot.slane %v787_v55, 4  ;;  %v811_v57 = vrot.slane %v809_v58, 4  ;;  %v823_v1 = vshrl.u32 %v1144_v51, 16 }
  0x36   : > { %v1153_v2 = vcombine.low %v765_v53, %v779_v0  ;;  %v801_v3 = vor.u32 %v800_v60, %v797_v48  ;;  %v806_v4 = vrot.slane %v804_v50, 5  ;;  %v814_v5 = vrot.slane %v812_v62, 5  ;;  %1219 = vmatprep.mubr.msk.bf16.mxu1 %vm373_vm0, %v1096_v52 }
  0x37   : > { %v825_v6 = vrot.slane %v823_v1, 4  ;;  %v826_v7 = vshll.u32 %v1144_v51, 16  ;;  %v832_v10 = vshll.u32 %v1145_v61, 16  ;;  %v793_v11 = vsel %vm1443_vm3, %v788_v56, %v792_v59 }
  0x38   : > { %1244 = vmatmul.mubr.msk.bf16.vlgmr.msra.gmra.mrb[0].mxu0 %vm373_vm0, %v1153_v2  ;;  %v802_v26 = vrot.slane %v801_v3, 4  ;;  %v815_v28 = vor.u32 %v814_v5, %v811_v57  ;;  %v820_v40 = vrot.slane %v818_v63, 5  ;;  %v1097_v13 = vcombine.low %v1486_v14, %v1489_v17 }
  0x39   : > { %v828_v12 = vrot.slane %v826_v7, 5  ;;  %v834_v21 = vrot.slane %v832_v10, 5 }
  0x3a   : > { %v807_v15 = vsel %vm1443_vm3, %v802_v26, %v806_v4  ;;  %v816_v16 = vrot.slane %v815_v28, 4 }
  0x3b   : > { %v1154_v19 = vcombine.low %v793_v11, %v807_v15  ;;  %v829_v20 = vor.u32 %v828_v12, %v825_v6 }
  0x3c   : > { %v821_v22 = vsel %vm1443_vm3, %v816_v16, %v820_v40 }
  0x3d   : > { %1247 = vmatprep.mubr.msk.bf16.mxu0 %vm373_vm0, %v1154_v19  ;;  %v830_v23 = vrot.slane %v829_v20, 4  ;;  %1220 = vmatmul.mubr.msk.bf16.gmra.mrb[4].mxu1 %vm373_vm0, %v1097_v13 }
  0x3f   : > { %v835_v24 = vsel %vm1443_vm3, %v830_v23, %v834_v21 }
  0x40   : > { %v1155_v25 = vcombine.low %v821_v22, %v835_v24 }
  0x42   : > { %1248 = vmatmul.mubr.msk.bf16.gmra.mrb[4].mxu0 %vm373_vm0, %v1155_v25 }
 0x108   : > { %v1217_v14 = vpop.f32.mrb[0].mxu1 }
 0x109   : > { %v535_v17 = vpop.f32.mrb[1].mxu1 }
 0x10a   : > { %v1218_v27 = vpop.f32.mrb[2].mxu1 }
 0x10b   : > { %v1245_v29 = vpop.f32.mrb[0].mxu0  ;;  %v538_v32 = vpop.f32.mrb[3].mxu1 }
 0x10c   : > { %v919_v33 = vpop.f32.mrb[1].mxu0  ;;  %v1251_v34 = vadd.f32 %v1245_v29, %v1217_v14 }
 0x10d   : > { %v1246_v35 = vpop.f32.mrb[2].mxu0  ;;  %v1252_v31 = vadd.f32 %v919_v33, %v535_v17 }
 0x10e   : > { %v922_v36 = vpop.f32.mrb[3].mxu0  ;;  %v967_v37 = vadd.f32 %v1251_v34, %v1163_v30  ;;  %v1253_v38 = vadd.f32 %v1246_v35, %v1218_v27 }
 0x10f   : > { %v965_v39 = vadd.f32 %v1252_v31, %v1163_v30  ;;  %v1254_v41 = vadd.f32 %v922_v36, %v538_v32 }
 0x110   : > { %976 = vst.msk [vmem:[%s1570_s26 + $0x10] sm:$0xff] %vm973_vm4, %v967_v37  ;;  %v968_v42 = vadd.f32 %v1253_v38, %v1163_v30  ;;  %v1221_v43 = vpop.f32.mrb[4].mxu1 }
 0x111   : > { %974 = vst.msk [vmem:[%s1570_s26] sm:$0xff] %vm973_vm4, %v965_v39  ;;  %v966_v44 = vadd.f32 %v1254_v41, %v1163_v30  ;;  %v551_v45 = vpop.f32.mrb[5].mxu1 }
 0x112   : > { %977 = vst.msk [vmem:[%s1570_s26 + $0x18] sm:$0xff] %vm973_vm4, %v968_v42  ;;  %v1222_v46 = vpop.f32.mrb[6].mxu1 }
 0x113   : > { %975 = vst.msk [vmem:[%s1570_s26 + $0x8] sm:$0xff] %vm973_vm4, %v966_v44  ;;  %v554_v8 = vpop.f32.mrb[7].mxu1 }
 0x115   : > { %v1249_v9 = vpop.f32.mrb[4].mxu0 }
 0x116   : > { %v935_v18 = vpop.f32.mrb[5].mxu0  ;;  %v1255_v47 = vadd.f32 %v1249_v9, %v1221_v43 }
 0x117   : > { %v1250_v48 = vpop.f32.mrb[6].mxu0  ;;  %v1256_v49 = vadd.f32 %v935_v18, %v551_v45 }
 0x118   : > { %v938_v50 = vpop.f32.mrb[7].mxu0  ;;  %v971_v51 = vadd.f32 %v1255_v47, %v1163_v30  ;;  %v1257_v52 = vadd.f32 %v1250_v48, %v1222_v46 }
 0x119   : > { %v969_v53 = vadd.f32 %v1256_v49, %v1163_v30  ;;  %v1258_v54 = vadd.f32 %v938_v50, %v554_v8 }
 0x11a   : > { %980 = vst.msk [vmem:[%s1570_s26 + $0x30] sm:$0xff] %vm973_vm4, %v971_v51  ;;  %v972_v55 = vadd.f32 %v1257_v52, %v1163_v30 }
 0x11b   : > { %978 = vst.msk [vmem:[%s1570_s26 + $0x20] sm:$0xff] %vm973_vm4, %v969_v53  ;;  %v970_v58 = vadd.f32 %v1258_v54, %v1163_v30 }
 0x11c   : > { %981 = vst.msk [vmem:[%s1570_s26 + $0x38] sm:$0xff] %vm973_vm4, %v972_v55 }
 0x11d   : > { %979 = vst.msk [vmem:[%s1570_s26 + $0x28] sm:$0xff] %vm973_vm4, %v970_v58 }
 0x11e PF: > { %s13_s14 = sadd.s32 1, %s1342_s14   ;;  %s1603_s12 = smov %s1338_s13 }
 0x11f   : > { %p10_p5 = scmp.ge.s32.totalorder %s13_s14, 4   ;;  %s1604_s13 = smov %s1606_s15 }
 0x121   :  { %12 = sbr.rel (!%p10_p5) target bundleno = 2 (0x2), region = 67 }

</bundles_post_ra>
